<compile_context>
chip_gen: v7x
topology: tpu7x:2x2x1
jax: 0.10.0
libtpu: 0.0.40
codegen_flags: <defaults>
</compile_context>

<pallas_src>
import jax
import jax.numpy as jnp
from jax import lax
from jax.experimental import pallas as pl
from jax.experimental.pallas import tpu as pltpu


def _round_up(x, m):
    return (x + m - 1) // m * m


def _predict_kernel(src_ref, dst_ref, w1s_ref, w1d_ref, b1_ref,
                    w2_ref, b2_ref, out_ref):
    # lin1 with the concat fused: cat(s, d) @ W1 == s @ W1[:E] + d @ W1[E:]
    h = (jnp.dot(src_ref[...], w1s_ref[...], preferred_element_type=jnp.float32)
         + jnp.dot(dst_ref[...], w1d_ref[...], preferred_element_type=jnp.float32)
         + b1_ref[...])
    h = jnp.maximum(h, 0.0)                                   # ReLU, (tm, H)

    # lin2 as (1,H) . (tm,H)^T -> (1,tm): row results land on the lane axis,
    # giving a lane-dense output store (avoids 1-lane masked vst per 8 rows).
    out_row = lax.dot_general(
        w2_ref[...], h,
        dimension_numbers=(((1,), (1,)), ((), ())),
        preferred_element_type=jnp.float32) + b2_ref[...]      # (1, tm)

    out_ref[...] = out_row.reshape(out_ref.shape).astype(out_ref.dtype)


def predict_layer_pallas(src_emb, dst_emb, w1, b1, w2, b2, *, tm=8192):
    """PredictLayer.forward.

    src_emb, dst_emb : [N, E]  float32
    w1               : [2E, H] (H = E // 4),  b1: [H]
    w2               : [H, 1],                b2: [1]
    returns          : [N, 1]  float32
    """
    N, E = src_emb.shape
    H = w1.shape[1]

    # ---- row-tile selection -------------------------------------------------
    # Biggest tile that fits comfortably in VMEM on all generations, clamped to
    # the (8-rounded) batch; keep >= 2 grid steps when possible for v7x's two
    # TensorCores (grid axis is marked "parallel").
    tm_eff = max(8, min(tm, _round_up(N, 8)))
    if -(-N // tm_eff) < 2 and N > 8:
        tm_eff = _round_up(-(-N // 2), 8)
    nb = -(-N // tm_eff)
    n_pad = nb * tm_eff

    if n_pad != N:  # pad batch instead of asserting N % tm == 0
        pad = n_pad - N
        src_emb = jnp.pad(src_emb, ((0, pad), (0, 0)))
        dst_emb = jnp.pad(dst_emb, ((0, pad), (0, 0)))

    w1_src = w1[:E, :]            # [E, H]
    w1_dst = w1[E:, :]            # [E, H]
    b1_2d = b1.reshape(1, H)      # [1, H]
    w2_row = w2.reshape(1, H)     # [1, H]   (lin2 weight as a row)
    b2_2d = b2.reshape(1, 1)      # [1, 1]

    # TODO(synk): optionally stream src/dst as bfloat16 (f32 accumulation kept
    # via preferred_element_type) for ~2x HBM traffic reduction; kept f32 here
    # to match the PyTorch f32 semantics exactly.

    out = pl.pallas_call(
        _predict_kernel,
        out_shape=jax.ShapeDtypeStruct((nb, 1, tm_eff), jnp.float32),
        grid=(nb,),
        in_specs=[
            pl.BlockSpec((tm_eff, E), lambda i: (i, 0)),   # src rows tile
            pl.BlockSpec((tm_eff, E), lambda i: (i, 0)),   # dst rows tile
            pl.BlockSpec((E, H), lambda i: (0, 0)),        # W1 (src half), resident
            pl.BlockSpec((E, H), lambda i: (0, 0)),        # W1 (dst half), resident
            pl.BlockSpec((1, H), lambda i: (0, 0)),        # b1
            pl.BlockSpec((1, H), lambda i: (0, 0)),        # W2 as row
            pl.BlockSpec((1, 1), lambda i: (0, 0)),        # b2
        ],
        out_specs=pl.BlockSpec((1, 1, tm_eff), lambda i: (i, 0, 0)),
        compiler_params=pltpu.CompilerParams(
            dimension_semantics=("parallel",)),
    )(src_emb, dst_emb, w1_src, w1_dst, b1_2d, w2_row, b2_2d)

    # (nb, 1, tm) -> flat row order -> drop padded rows -> (N, 1)
    return out.reshape(-1)[:N].reshape(N, 1)


# TODO(synk): CDGCN.forward(mfgs, nodes) is `pass` in the reference (graph
# message-flow aggregation never implemented), so only PredictLayer is lowered.


if __name__ == "__main__":
    key = jax.random.PRNGKey(0)
    emb_sz = 32            # self.emb_sz
    hidden = emb_sz // 4   # lin1 out features = 8
    batch = 19             # odd batch exercises padding + multi-step grid

    k_src, k_dst, k_w1, k_b1, k_w2, k_b2 = jax.random.split(key, 6)
    src_emb = jax.random.normal(k_src, (batch, emb_sz), dtype=jnp.float32)
    dst_emb = jax.random.normal(k_dst, (batch, emb_sz), dtype=jnp.float32)

    # Deterministic synthetic parameters (layout [in, out]).
    w1 = jax.random.normal(k_w1, (2 * emb_sz, hidden), dtype=jnp.float32) * 0.1
    b1 = jax.random.normal(k_b1, (hidden,), dtype=jnp.float32) * 0.1
    w2 = jax.random.normal(k_w2, (hidden, 1), dtype=jnp.float32) * 0.1
    b2 = jax.random.normal(k_b2, (1,), dtype=jnp.float32) * 0.1

    out = predict_layer_pallas(src_emb, dst_emb, w1, b1, w2, b2)
    out = jax.block_until_ready(out)

    # Reference (plain JAX, exact f32) check of the same semantics.
    cat = jnp.concatenate([src_emb, dst_emb], axis=1)
    ref_h = jnp.maximum(
        jnp.dot(cat, w1, precision=lax.Precision.HIGHEST) + b1, 0.0)
    ref = jnp.dot(ref_h, w2, precision=lax.Precision.HIGHEST) + b2

    assert out.shape == (batch, 1)
    assert jnp.allclose(out, ref, atol=1e-5, rtol=1e-5)

    print("KERNEL_OK")
</pallas_src>

<mosaic_0001>
module attributes {stable_mosaic.version = 11 : i64} {
  func.func @_predict_kernel(%arg0: i32, %arg1: memref<16x32xf32, #tpu.memory_space<vmem>>, %arg2: memref<16x32xf32, #tpu.memory_space<vmem>>, %arg3: memref<32x8xf32, #tpu.memory_space<vmem>>, %arg4: memref<32x8xf32, #tpu.memory_space<vmem>>, %arg5: memref<1x8xf32, #tpu.memory_space<vmem>>, %arg6: memref<1x8xf32, #tpu.memory_space<vmem>>, %arg7: memref<1x1xf32, #tpu.memory_space<vmem>>, %arg8: memref<1x1x16xf32, #tpu.memory_space<vmem>>) attributes {dimension_semantics = [#tpu.dimension_semantics<parallel>], iteration_bounds = array<i64: 2>, scalar_prefetch = 0 : i64, scratch_operands = 0 : i64, tpu.core_type = #tpu.core_type<tc>, window_params = [{transform_indices = @transform_0, window_bounds = array<i64: 16, 32>}, {transform_indices = @transform_1, window_bounds = array<i64: 16, 32>}, {pipeline_mode = #tpu.pipeline_mode<synchronous>, transform_indices = @transform_2, window_bounds = array<i64: 32, 8>}, {pipeline_mode = #tpu.pipeline_mode<synchronous>, transform_indices = @transform_3, window_bounds = array<i64: 32, 8>}, {pipeline_mode = #tpu.pipeline_mode<synchronous>, transform_indices = @transform_4, window_bounds = array<i64: 1, 8>}, {pipeline_mode = #tpu.pipeline_mode<synchronous>, transform_indices = @transform_5, window_bounds = array<i64: 1, 8>}, {pipeline_mode = #tpu.pipeline_mode<synchronous>, transform_indices = @transform_6, window_bounds = array<i64: 1, 1>}, {transform_indices = @transform_7, window_bounds = array<i64: 1, 1, 16>}]} {
    %c0 = arith.constant 0 : index
    %c0_0 = arith.constant 0 : index
    %0 = vector.load %arg1[%c0, %c0_0] : memref<16x32xf32, #tpu.memory_space<vmem>>, vector<16x32xf32>
    %c0_1 = arith.constant 0 : index
    %c0_2 = arith.constant 0 : index
    %1 = vector.load %arg3[%c0_1, %c0_2] : memref<32x8xf32, #tpu.memory_space<vmem>>, vector<32x8xf32>
    %cst = arith.constant dense<0.000000e+00> : vector<16x8xf32>
    %2 = tpu.matmul %0, %1, %cst {dimension_numbers = #tpu.dot_dimension_numbers<[1], [0], [0], [1], [0, 0, 1, 1], [], []>} : vector<16x32xf32>, vector<32x8xf32>, vector<16x8xf32> -> vector<16x8xf32>
    %c0_3 = arith.constant 0 : index
    %c0_4 = arith.constant 0 : index
    %3 = vector.load %arg2[%c0_3, %c0_4] : memref<16x32xf32, #tpu.memory_space<vmem>>, vector<16x32xf32>
    %c0_5 = arith.constant 0 : index
    %c0_6 = arith.constant 0 : index
    %4 = vector.load %arg4[%c0_5, %c0_6] : memref<32x8xf32, #tpu.memory_space<vmem>>, vector<32x8xf32>
    %cst_7 = arith.constant dense<0.000000e+00> : vector<16x8xf32>
    %5 = tpu.matmul %3, %4, %cst_7 {dimension_numbers = #tpu.dot_dimension_numbers<[1], [0], [0], [1], [0, 0, 1, 1], [], []>} : vector<16x32xf32>, vector<32x8xf32>, vector<16x8xf32> -> vector<16x8xf32>
    %6 = arith.addf %2, %5 : vector<16x8xf32>
    %c0_8 = arith.constant 0 : index
    %c0_9 = arith.constant 0 : index
    %7 = vector.load %arg5[%c0_8, %c0_9] : memref<1x8xf32, #tpu.memory_space<vmem>>, vector<1x8xf32>
    %8 = vector.broadcast %7 : vector<1x8xf32> to vector<16x8xf32>
    %9 = arith.addf %6, %8 : vector<16x8xf32>
    %cst_10 = arith.constant 0.000000e+00 : f32
    %10 = vector.broadcast %cst_10 : f32 to vector<16x8xf32>
    %11 = arith.maximumf %9, %10 : vector<16x8xf32>
    %c0_11 = arith.constant 0 : index
    %c0_12 = arith.constant 0 : index
    %12 = vector.load %arg6[%c0_11, %c0_12] : memref<1x8xf32, #tpu.memory_space<vmem>>, vector<1x8xf32>
    %cst_13 = arith.constant dense<0.000000e+00> : vector<1x16xf32>
    %13 = tpu.matmul %12, %11, %cst_13 {dimension_numbers = #tpu.dot_dimension_numbers<[1], [1], [0], [0], [0, 0, 1, 0], [], []>} : vector<1x8xf32>, vector<16x8xf32>, vector<1x16xf32> -> vector<1x16xf32>
    %c0_14 = arith.constant 0 : index
    %c0_15 = arith.constant 0 : index
    %14 = vector.load %arg7[%c0_14, %c0_15] : memref<1x1xf32, #tpu.memory_space<vmem>>, vector<1x1xf32>
    %15 = vector.broadcast %14 : vector<1x1xf32> to vector<1x16xf32>
    %16 = arith.addf %13, %15 : vector<1x16xf32>
    %17 = vector.shape_cast %16 : vector<1x16xf32> to vector<1x1x16xf32>
    %c0_16 = arith.constant 0 : index
    %c0_17 = arith.constant 0 : index
    %c0_18 = arith.constant 0 : index
    %18 = vector.load %arg8[%c0_16, %c0_17, %c0_18] : memref<1x1x16xf32, #tpu.memory_space<vmem>>, vector<1x1x16xf32>
    tpu.vector_store %arg8[%c0_16, %c0_17, %c0_18], %17 {strides = array<i32>} : memref<1x1x16xf32, #tpu.memory_space<vmem>>, vector<1x1x16xf32>,
    return
  }
  func.func @transform_0(%arg0: i32) -> (i32, i32) {
    %c0_i32 = arith.constant 0 : i32
    %c0_i32_0 = arith.constant 0 : i32
    return %arg0, %c0_i32 : i32, i32
  }
  func.func @transform_1(%arg0: i32) -> (i32, i32) {
    %c0_i32 = arith.constant 0 : i32
    %c0_i32_0 = arith.constant 0 : i32
    return %arg0, %c0_i32 : i32, i32
  }
  func.func @transform_2(%arg0: i32) -> (i32, i32) {
    %c0_i32 = arith.constant 0 : i32
    %c0_i32_0 = arith.constant 0 : i32
    %c0_i32_1 = arith.constant 0 : i32
    return %c0_i32, %c0_i32_0 : i32, i32
  }
  func.func @transform_3(%arg0: i32) -> (i32, i32) {
    %c0_i32 = arith.constant 0 : i32
    %c0_i32_0 = arith.constant 0 : i32
    %c0_i32_1 = arith.constant 0 : i32
    return %c0_i32, %c0_i32_0 : i32, i32
  }
  func.func @transform_4(%arg0: i32) -> (i32, i32) {
    %c0_i32 = arith.constant 0 : i32
    %c0_i32_0 = arith.constant 0 : i32
    %c0_i32_1 = arith.constant 0 : i32
    return %c0_i32, %c0_i32_0 : i32, i32
  }
  func.func @transform_5(%arg0: i32) -> (i32, i32) {
    %c0_i32 = arith.constant 0 : i32
    %c0_i32_0 = arith.constant 0 : i32
    %c0_i32_1 = arith.constant 0 : i32
    return %c0_i32, %c0_i32_0 : i32, i32
  }
  func.func @transform_6(%arg0: i32) -> (i32, i32) {
    %c0_i32 = arith.constant 0 : i32
    %c0_i32_0 = arith.constant 0 : i32
    %c0_i32_1 = arith.constant 0 : i32
    return %c0_i32, %c0_i32_0 : i32, i32
  }
  func.func @transform_7(%arg0: i32) -> (i32, i32, i32) {
    %c0_i32 = arith.constant 0 : i32
    %c0_i32_0 = arith.constant 0 : i32
    %c0_i32_1 = arith.constant 0 : i32
    return %arg0, %c0_i32, %c0_i32_0 : i32, i32, i32
  }
}

</mosaic_0001>

<bundles_post_ra>
// kernel: tpu_custom_call.1
= control target key start
LH: loop header
LB: loop body
LE: loop exit
PB: predicated region body
PF: predicated region fallthrough
CT: control target
= control target key end

     0   :  { %s1038_s0 = inlined_call_operand.vmem [shape: f32[32,32], index: 0, kind: input, shape index: {}]   ;;  %s1039_s1 = inlined_call_operand.vmem [shape: f32[32,32], index: 1, kind: input, shape index: {}]   ;;  %s1040_s2 = inlined_call_operand.vmem [shape: f32[32,8], index: 2, kind: input, shape index: {}]   ;;  %s1041_s3 = inlined_call_operand.vmem [shape: f32[32,8], index: 3, kind: input, shape index: {}]   ;;  %s1042_s4 = inlined_call_operand.vmem [shape: f32[1,8], index: 4, kind: input, shape index: {}]   ;;  %s1043_s5 = inlined_call_operand.vmem [shape: f32[1,8], index: 5, kind: input, shape index: {}]   ;;  %s1044_s6 = inlined_call_operand.<no memory space> [shape: f32[1,1], index: 6, kind: input, shape index: {}]   ;;  %s1045_s7 = inlined_call_operand.hbm [shape: f32[2,1,16], index: 7, kind: output, shape index: {}]  }
   0x1   :  { %v12_v0 = vstv %s1044_s6 }
   0x2   :  { %13 = vst [vmem:[#allocation2] sm:$0x1] %v12_v0 }
   0x3   :  { %14 = vsyncpa [#allocation4], 0 }
   0x4   :  { %16 = vsyncpa [#allocation4 + $0x1], 0  ;;  %s902_s26 = smov 0   ;;  %s904_s27 = smov 0  }
   0x5   :  { %s906_s28 = smov 0   ;;  %s908_s29 = smov 0  }
   0x6 LB: > { %s923_s6 = sadd.s32 4294967295, %s852_s29   ;;  %s661_s30 = sadd.s32 4294967294, %s852_s29   ;;  %s852_s29 = sphi %s908_s29, %s1051_s29   ;;  %s848_s28 = sphi %s906_s28, %s1050_s28   ;;  %s844_s27 = sphi %s904_s27, %s1049_s27   ;;  %s840_s26 = sphi %s902_s26, %s1048_s26  }
   0x7   : > { %s927_s8 = sadd.s32 1, %s852_s29   ;;  %s186_s9 = sadd.s32 1, %s848_s28 }
   0x8   : > { %s183_s10 = ssub.s32 %s852_s29, %s927_s8  ;;  %p196_p0 = scmp.ne.s32.totalorder %s848_s28, %s844_s27 }
   0x9   : > { %p184_p1 = scmp.eq.s32.totalorder %s183_s10, 0  ;;  %p197_p2 = scmp.eq.s32.totalorder %s923_s6, 1 }
   0xa   : > { %p202_p3 = scmp.ne.s32.totalorder %s844_s27, %s840_s26  ;;  %p203_p4 = scmp.eq.s32.totalorder %s661_s30, 1 }
   0xb   : > { %s938_s11 = scalar_select %p184_p1, %s848_s28, %s186_s9  }
   0xc   : > { %p940_p5 = por %p197_p2, %p196_p0  ;;  %p944_p6 = por %p203_p4, %p202_p3 }
   0xd   : > { %p664_p7 = scmp.ge.s32.totalorder %s852_s29, 1  ;;  %p254_p8 = scmp.lt.s32.totalorder %s852_s29, 3 }
   0xf   : > { %p255_p9 = pnand %p664_p7, %p254_p8 }
  0x10   : > { %v310_v1 = vld [vmem:[%s1041_s3] sm:$0xff] (!%p255_p9)  ;;  %v311_v2 = vld [vmem:[%s1041_s3 + $0x8] sm:$0xff] (!%p255_p9)  ;;  %v312_v3 = vld [vmem:[%s1041_s3 + $0x10] sm:$0xff] (!%p255_p9)  ;;  %s665_s20 = sshll.u32 (!%p255_p9), %s923_s6, 1  ;;  %vm314_vm0 = vcmask (!%p255_p9), 261120   ;;  %v854_v17 = vmov (!%p255_p9), 0.0|0.0   ;;  %v495_v30 = vlaneseq (!%p255_p9) }
  0x11   : > { %258 = sbr.rel (%p255_p9) target bundleno = 491 (0x1eb), region = 48  ;;  %v724_v4 = vpack.c.bf16 (!%p255_p9), %v311_v2, %v310_v1  ;;  %v313_v5 = vld [vmem:[%s1041_s3 + $0x18] sm:$0xff] (!%p255_p9)  ;;  %p291_p10 = scmp.lt.s32.totalorder (!%p255_p9), %s665_s20, 3  ;;  %v304_v7 = vld [vmem:[%s1040_s2] sm:$0xff] (!%p255_p9)  ;;  %v305_v8 = vld [vmem:[%s1040_s2 + $0x8] sm:$0xff] (!%p255_p9)  ;;  %740 = vmatprep.subr.bf16.mxu1 (!%p255_p9), %v854_v17  ;;  %vm855_vm1 = vmmov (!%p255_p9), 0  }
  0x12   : > { %v728_v6 = vpack.c.bf16 (!%p255_p9), %v313_v5, %v312_v3  ;;  %v732_v9 = vpack.c.bf16 (!%p255_p9), %v305_v8, %v304_v7  ;;  %v306_v10 = vld [vmem:[%s1040_s2 + $0x10] sm:$0xff] (!%p255_p9)  ;;  %v307_v11 = vld [vmem:[%s1040_s2 + $0x18] sm:$0xff] (!%p255_p9)  ;;  %v856_v18 = vmov (!%p255_p9), 0.0   ;;  %v489_v19 = vld [vmem:[#allocation2] sm:$0x1] (!%p255_p9)  ;;  %v857_v20 = vmov (!%p255_p9), 0  }
  0x13   : > { %725 = vmatprep.subr.bf16.mxu0 (!%p255_p9), %v724_v4  ;;  %v736_v14 = vpack.c.bf16 (!%p255_p9), %v307_v11, %v306_v10  ;;  %721 = vmatprep.mubr.msk.f32.mxu1 (!%p255_p9), %vm855_vm1, %v856_v18  ;;  %v673_v21 = vld [vmem:[%s1042_s4] ss:$0 sm:$0xff] (!%p255_p9)  ;;  %vm499_vm2 = vcmask (!%p255_p9), 64512   ;;  %v496_v31 = vshrl.u32 (!%p255_p9), %v495_v30, 7  ;;  %s677_s10 = sshll.u32 (!%p255_p9), %s923_s6, 4  ;;  %vm579_vm4 = vcmask (!%p255_p9), 122880  }
  0x14   : > { %727 = vmatpush3.bf16.msra.mxu0 (!%p255_p9), %v724_v4  ;;  %789 = vset.pattern.permute.xlu0 (!%p255_p9), %v857_v20  ;;  %vm742_vm3 = vmpackc.low (!%p255_p9), %vm499_vm2, %vm499_vm2  ;;  %v488_v29 = vld [vmem:[%s1043_s5] sm:$0x1] (!%p255_p9)  ;;  %s858_s6 = smov (!%p255_p9), [#allocation3]  }
  0x15   : > { %729 = vmatprep.subr.bf16.mxu0 (!%p255_p9), %v728_v6  ;;  %492 = vperm.xlu0 (!%p255_p9), %789, %v489_v19   ;;  %v497_v32 = vsub.s32 (!%p255_p9), 0, %v496_v31  ;;  %s794_s22 = sshll.u32 (!%p255_p9), %s858_s6, 4  ;;  %s795_s22 = int_to_ptr.vmem [resolvable:$false] %s794_s22 }
  0x16   : > { %s796_s23 = scalar_lea.vmem (!%p255_p9), %s795_s22, 32 }
  0x18   : > { %s1053_s20 = smov (!%p291_p10, %s665_s20), 3  ;;  %731 = vmatpush3.bf16.msra.mxu0 %v728_v6 }
  0x19   : > { %s666_s9 = sshll.u32 %s1053_s20, 3  ;;  %733 = vmatprep.subr.bf16.mxu0 %v732_v9 }
  0x1a   : > { %s294_s15 = scalar_lea.vmem %s1038_s0, %s666_s9  ;;  %s300_s18 = scalar_lea.vmem %s1039_s1, %s666_s9 }
  0x1b   : > { %v308_v12 = vld [vmem:[%s300_s18] sm:$0xff]  ;;  %v309_v13 = vld [vmem:[%s300_s18 + $0x8] sm:$0xff]  ;;  %s288_s9 = sand.u32 1, %s844_s27   ;;  %s996_s18 = scalar_lea.hbm %s1045_s7, %s677_s10 }
  0x1c   : > { %703 = vmatprep.mubr.msk.f32.mxu0 %vm314_vm0, %v308_v12  ;;  %v302_v15 = vld [vmem:[%s294_s15] sm:$0xff]  ;;  %v303_v16 = vld [vmem:[%s294_s15 + $0x8] sm:$0xff]  ;;  %s289_s14 = scalar_lea.vmem [#allocation3], %s288_s9  ;;  %s582_s19 = scalar_lea.sflag [#allocation4], %s288_s9 }
  0x1d   : > { %704 = vmatmul.mubr.msk.f32.vlgmr.msra.gmra.mrb[0].mxu0 %vm314_vm0, %v309_v13  ;;  %s594_s15 = sshll.u32 %s289_s14, 4  ;;  %s998_s15 = int_to_ptr.vmem [resolvable:$true] %s594_s15 }
  0x1e   : > { %735 = vmatpush3.bf16.msra.mxu0 %v732_v9  ;;  %714 = vmatprep.mubr.msk.f32.mxu0 %vm314_vm0, %v302_v15  ;;  %s790_s21 = scalar_lea.vmem %s998_s15, 16  ;;  %p797_p0 = scmp.lt.s32.totalorder %s998_s15, %s795_s22 }
  0x1f   : > { %737 = vmatprep.subr.bf16.mxu0 %v736_v14  ;;  %p791_p11 = scmp.ne.s32.totalorder %s998_s15, %s790_s21  ;;  %p798_p1 = scmp.lt.s32.totalorder %s796_s23, %s790_s21 }
  0x21   : > { %p792_p12 = pnand %p791_p11, %p940_p5  ;;  %p799_p2 = por %p798_p1, %p797_p0 }
  0x22   : > { %739 = vmatpush3.bf16.msra.mxu0 %v736_v14 }
  0x23   : > { %p793_p13 = pneg %p792_p12 }
  0x25   : > { %715 = vmatmul.mubr.msk.f32.vlgmr.msra.gmra.mrb[0].mxu0 %vm314_vm0, %v303_v16  ;;  %p800_p3 = pnand %p799_p2, %p793_p13 }
  0x94   : > { %v493_v33 = vpop.permute.xlu0 %492 }
  0x95   : > { %v498_v34 = vrot.slane %v493_v33, %v497_v32 }
  0xf8   : > { %v716_v22 = vpop.f32.mrb[0].mxu0 }
  0xf9   : > { %v485_v23 = vadd.f32 %v716_v22, %v673_v21  ;;  %v468_v24 = vpop.f32.mrb[1].mxu0 }
  0xfa   : > { %v484_v25 = vadd.f32 %v673_v21, %v468_v24 }
  0xfb   : > { %v487_v26 = vmax.f32 %v485_v23, 0.0 }
  0xfc   : > { %v486_v27 = vmax.f32 %v484_v25, 0.0 }
  0xfe   : > { %v741_v28 = vpack.c.bf16 %v487_v26, %v486_v27 }
 0x100   : > { %743 = vmatpush3.bf16.xpose.msk.msra.mxu1 %vm742_vm3, %v741_v28 }
 0x107   : > { %722 = vmatmul.mubr.msk.f32.vlgmr.msra.gmra.mrb[0].mxu1 %vm499_vm2, %v488_v29 }
 0x1da   : > { %v575_v35 = vpop.f32.mrb[0].mxu1 }
 0x1db   : > { %v576_v36 = vadd.f32 %v575_v35, %v498_v34  ;;  %v723_v37 = vpop.f32.mrb[1].mxu1 }
 0x1dd   : > { %580 = vst.msk [vmem:[%s289_s14] sm:$0x1] %vm579_vm4, %v576_v36 }
 0x1de   : > { %803 = shalt.err (!%p800_p3)
}
 0x1df   : > { %s804_s20 = scalar_lea.hbm %s996_s18, 16  ;;  %s808_s30 = scalar_lea.hbm %s1045_s7, 32 }
 0x1e0   : > { %p805_p4 = scmp.ne.s32.totalorder %s996_s18, %s804_s20  ;;  %p809_p9 = scmp.lt.u32.totalorder %s996_s18, %s1045_s7 }
 0x1e1   : > { %p810_p10 = scmp.lt.u32.totalorder %s808_s30, %s804_s20  ;;  %p812_p12 = scmp.lt.u32.totalorder %s804_s20, %s996_s18 }
 0x1e2   : > { %p806_p7 = pnand %p805_p4, %p940_p5 }
 0x1e3   : > { %p811_p11 = por %p810_p10, %p809_p9 }
 0x1e4   : > { %p807_p8 = pneg %p806_p7 }
 0x1e5   : > { %p813_p13 = por %p812_p12, %p811_p11 }
 0x1e7   : > { %p814_p0 = pnand %p813_p13, %p807_p8 }
 0x1e9   : > { %817 = shalt.err (!%p814_p0)
}
 0x1ea   : > { %746 = dma.vmem_to_hbm [thread:$0]  (%p940_p5), %s998_s15, 16, %s996_s18, %s582_s19  }
 0x1eb PF: > { %p752_p1 = scmp.ge.s32.totalorder %s852_s29, 2  ;;  %s606_s14 = sand.u32 1, %s840_s26  }
 0x1ec   : > { %s607_s16 = scalar_lea.sflag [#allocation4], %s606_s14 }
 0x1ed   : > { %p749_p2 = pnand %p752_p1, %p944_p6 }
 0x1ef   : > { %835 = dma.done.wait (!%p749_p2), %s607_s16, 16  }
 0x1f0   : > { %837 = vsyncadd (!%p749_p2), %s607_s16, 4294967280  ;;  %p19_p3 = scmp.ge.s32.totalorder %s927_s8, 4   ;;  %s1048_s26 = smov %s844_s27 }
 0x1f1   : > { %s1049_s27 = smov %s848_s28  ;;  %s1050_s28 = smov %s938_s11 }
 0x1f2   : > { %s1051_s29 = smov %s927_s8  ;;  %21 = sbr.rel (!%p19_p3) target bundleno = 6 (0x6), region = 86 }
 0x1f9   :  { %611 = vsyncpa [#allocation4], 1 }
 0x1fa   :  { %613 = vsyncpa [#allocation4 + $0x1], 1 }

</bundles_post_ra>
